<compile_context>
chip_gen: v7x
topology: tpu7x:2x2x1
jax: 0.10.0
libtpu: 0.0.40
codegen_flags: <defaults>
</compile_context>

<pallas_src>
import functools
import math

import jax
import jax.numpy as jnp
from jax.experimental import pallas as pl
from jax.experimental.pallas import tpu as pltpu


def _round_up(x, m):
    return (x + m - 1) // m * m


def _cdiv(a, b):
    return -(-a // b)


def _deviation_monitor_kernel(dev_ref, prev_ref, h_ref, vg_ref, ll_ref,
                              w1d_ref, w1p_ref, w1h_ref, w1v_ref, w1l_ref,
                              b1_ref, w2_ref, b2_ref, w3_ref, b3_ref, out_ref):
    """Fused 3-layer MLP on one batch tile, with the concat fused as split-K."""
    # ---- Layer 1: Linear(in, 256), concat fused as split-K matmuls + rank-1 terms.
    z1 = jnp.dot(prev_ref[...], w1p_ref[...], preferred_element_type=jnp.float32)
    z1 += jnp.dot(h_ref[...], w1h_ref[...], preferred_element_type=jnp.float32)
    z1 += jnp.dot(vg_ref[...], w1v_ref[...], preferred_element_type=jnp.float32)
    z1 += dev_ref[...] * w1d_ref[...]          # (tb,1)*(1,256) broadcast FMA (VPU)
    z1 += ll_ref[...] * w1l_ref[...]           # (tb,1)*(1,256) broadcast FMA (VPU)
    z1 += b1_ref[...]

    # Sigmoid via the exact identity sigmoid(z) = 0.5*(tanh(z/2)+1)  (single EUP op).
    h1 = 0.5 * (jnp.tanh(0.5 * z1) + 1.0)

    # ---- Layer 2: Linear(256, 64) + ReLU.
    h2 = jnp.maximum(
        jnp.dot(h1, w2_ref[...], preferred_element_type=jnp.float32) + b2_ref[...],
        0.0)

    # ---- Layer 3: Linear(64, 1) as VPU multiply + lane reduce (skip the N=1 MXU op).
    y = jnp.sum(h2 * w3_ref[...], axis=-1)     # (tb,)
    # Lane-dense store: one (1, tb) row per grid step.
    out_ref[...] = y.reshape(1, -1) + b3_ref[...]


@functools.partial(jax.jit, static_argnames=("block_b",))
def deviation_monitor(last_dev, prev_h_t, h_t, c_t, v_ground, t_ground,
                      alpha_v, alpha_t, last_logit, params, *, block_b=1024):
    """Pallas forward of DeviationMonitor.  Returns h of shape (B,)."""
    del c_t, t_ground, alpha_v, alpha_t  # unused by the PyTorch forward
    w1d, w1p, w1h, w1v, w1l, b1, w2, b2, w3, b3 = params

    B, H = prev_h_t.shape
    E = v_ground.shape[1]

    dev = last_dev.reshape(B, 1).astype(jnp.float32)
    ll = last_logit.reshape(B, 1).astype(jnp.float32)
    prev = prev_h_t.astype(jnp.float32)
    ht = h_t.astype(jnp.float32)
    vg = v_ground.astype(jnp.float32)

    # Batch tile selection:
    #  * tiny B  -> one full-extent block (no padding, no alignment constraint);
    #  * large B -> 128-aligned tiles (lane-dense flat output stays legal), capped
    #    at block_b, and sized so the grid keeps >= 2 parallel steps (v7x megacore).
    block_b = _round_up(block_b, 128)
    if B <= 256:
        tb = B
    else:
        tb = min(block_b, _round_up(_cdiv(B, 2), 128))
    num_tiles = _cdiv(B, tb)

    def batch_spec(cols):
        return pl.BlockSpec((tb, cols), lambda i: (i, 0))

    def const_spec(shape):
        return pl.BlockSpec(shape, lambda i: (0, 0))   # VMEM-resident weights

    out = pl.pallas_call(
        _deviation_monitor_kernel,
        out_shape=jax.ShapeDtypeStruct((1, num_tiles * tb), jnp.float32),
        grid=(num_tiles,),
        in_specs=[
            batch_spec(1),            # last_dev column
            batch_spec(H),            # prev_h_t
            batch_spec(H),            # h_t
            batch_spec(E),            # v_ground
            batch_spec(1),            # last_logit column
            const_spec(w1d.shape),    # layer-1 weight, pre-split row-wise
            const_spec(w1p.shape),
            const_spec(w1h.shape),
            const_spec(w1v.shape),
            const_spec(w1l.shape),
            const_spec(b1.shape),
            const_spec(w2.shape),
            const_spec(b2.shape),
            const_spec(w3.shape),     # (1, 64) row for the in-kernel reduce
            const_spec(b3.shape),
        ],
        out_specs=pl.BlockSpec((1, tb), lambda i: (0, i)),
        compiler_params=pltpu.CompilerParams(
            dimension_semantics=("parallel",)),
    )(dev, prev, ht, vg, ll, w1d, w1p, w1h, w1v, w1l, b1, w2, b2, w3, b3)

    # Ragged tail rows (if any) are garbage and are discarded here.
    return out[0, :B]


def make_params(key, embedding_size, hidden_size):
    """MLP params.  Layer-1 weight is generated as one (input_size, 256) matrix
    (PyTorch-style fan-in init) and then split row-wise to match the fused,
    un-concatenated kernel inputs.  Layer-3 weight is stored as a (1, 64) row."""
    H, E = hidden_size, embedding_size
    input_size = 1 + 1 + 2 * H + E
    ks = jax.random.split(key, 6)

    def lin(kw, kb, fan_in, fan_out):
        bound = 1.0 / math.sqrt(fan_in)
        w = jax.random.uniform(kw, (fan_in, fan_out), jnp.float32, -bound, bound)
        b = jax.random.uniform(kb, (1, fan_out), jnp.float32, -bound, bound)
        return w, b

    w1, b1 = lin(ks[0], ks[1], input_size, 256)
    w2, b2 = lin(ks[2], ks[3], 256, 64)
    w3, b3 = lin(ks[4], ks[5], 64, 1)

    w1d = w1[0:1]                      # last_dev column
    w1p = w1[1:1 + H]                  # prev_h_t rows
    w1h = w1[1 + H:1 + 2 * H]          # h_t rows
    w1v = w1[1 + 2 * H:1 + 2 * H + E]  # v_ground rows
    w1l = w1[1 + 2 * H + E:]           # last_logit column
    return (w1d, w1p, w1h, w1v, w1l, b1, w2, b2, w3.T, b3)


def reference(last_dev, prev_h_t, h_t, c_t, v_ground, t_ground,
              alpha_v, alpha_t, last_logit, params):
    """Pure-JAX mirror of the PyTorch DeviationMonitor.forward (concat + 3 linears)."""
    del c_t, t_ground, alpha_v, alpha_t
    w1d, w1p, w1h, w1v, w1l, b1, w2, b2, w3, b3 = params
    w1 = jnp.concatenate([w1d, w1p, w1h, w1v, w1l], axis=0)
    x = jnp.concatenate(
        [last_dev[:, None], prev_h_t, h_t, v_ground, last_logit[:, None]], axis=1)
    h1 = jax.nn.sigmoid(x @ w1 + b1[0])
    h2 = jnp.maximum(h1 @ w2 + b2[0], 0.0)
    y = h2 @ w3.T + b3
    return y[:, 0]


if __name__ == "__main__":
    B = 2
    hidden_size = 32
    embedding_size = 32
    text_len = 80
    n_views = 8

    key = jax.random.PRNGKey(0)
    (k_ld, k_ph, k_ht, k_ct, k_vg, k_tg, k_av, k_at, k_ll, k_p) = jax.random.split(key, 10)

    last_dev = jax.random.normal(k_ld, (B,), jnp.float32)
    prev_h_t = jax.random.normal(k_ph, (B, hidden_size), jnp.float32)
    h_t = jax.random.normal(k_ht, (B, hidden_size), jnp.float32)
    c_t = jax.random.normal(k_ct, (B, hidden_size), jnp.float32)           # unused by forward
    v_ground = jax.random.normal(k_vg, (B, embedding_size), jnp.float32)
    t_ground = jax.random.normal(k_tg, (B, hidden_size), jnp.float32)      # unused by forward
    alpha_v = jax.nn.softmax(jax.random.normal(k_av, (B, n_views), jnp.float32), -1)    # unused
    alpha_t = jax.nn.softmax(jax.random.normal(k_at, (B, text_len), jnp.float32), -1)   # unused
    last_logit = jax.random.normal(k_ll, (B,), jnp.float32)

    params = make_params(k_p, embedding_size, hidden_size)

    out = deviation_monitor(last_dev, prev_h_t, h_t, c_t, v_ground, t_ground,
                            alpha_v, alpha_t, last_logit, params)
    jax.block_until_ready(out)

    out_ref = reference(last_dev, prev_h_t, h_t, c_t, v_ground, t_ground,
                        alpha_v, alpha_t, last_logit, params)

    assert out.shape == (B,)
    assert jnp.allclose(out, out_ref, rtol=1e-4, atol=1e-4), (out, out_ref)

    print("KERNEL_OK")
</pallas_src>

<mosaic_0001>
module attributes {stable_mosaic.version = 11 : i64} {
  func.func @_deviation_monitor_kernel(%arg0: i32, %arg1: memref<2x1xf32, #tpu.memory_space<vmem>>, %arg2: memref<2x32xf32, #tpu.memory_space<vmem>>, %arg3: memref<2x32xf32, #tpu.memory_space<vmem>>, %arg4: memref<2x32xf32, #tpu.memory_space<vmem>>, %arg5: memref<2x1xf32, #tpu.memory_space<vmem>>, %arg6: memref<1x256xf32, #tpu.memory_space<vmem>>, %arg7: memref<32x256xf32, #tpu.memory_space<vmem>>, %arg8: memref<32x256xf32, #tpu.memory_space<vmem>>, %arg9: memref<32x256xf32, #tpu.memory_space<vmem>>, %arg10: memref<1x256xf32, #tpu.memory_space<vmem>>, %arg11: memref<1x256xf32, #tpu.memory_space<vmem>>, %arg12: memref<256x64xf32, #tpu.memory_space<vmem>>, %arg13: memref<1x64xf32, #tpu.memory_space<vmem>>, %arg14: memref<1x64xf32, #tpu.memory_space<vmem>>, %arg15: memref<1x1xf32, #tpu.memory_space<vmem>>, %arg16: memref<1x2xf32, #tpu.memory_space<vmem>>) attributes {dimension_semantics = [#tpu.dimension_semantics<parallel>], iteration_bounds = array<i64: 1>, scalar_prefetch = 0 : i64, scratch_operands = 0 : i64, tpu.core_type = #tpu.core_type<tc>, window_params = [{transform_indices = @transform_0, window_bounds = array<i64: 2, 1>}, {transform_indices = @transform_1, window_bounds = array<i64: 2, 32>}, {transform_indices = @transform_2, window_bounds = array<i64: 2, 32>}, {transform_indices = @transform_3, window_bounds = array<i64: 2, 32>}, {transform_indices = @transform_4, window_bounds = array<i64: 2, 1>}, {pipeline_mode = #tpu.pipeline_mode<synchronous>, transform_indices = @transform_5, window_bounds = array<i64: 1, 256>}, {pipeline_mode = #tpu.pipeline_mode<synchronous>, transform_indices = @transform_6, window_bounds = array<i64: 32, 256>}, {pipeline_mode = #tpu.pipeline_mode<synchronous>, transform_indices = @transform_7, window_bounds = array<i64: 32, 256>}, {pipeline_mode = #tpu.pipeline_mode<synchronous>, transform_indices = @transform_8, window_bounds = array<i64: 32, 256>}, {pipeline_mode = #tpu.pipeline_mode<synchronous>, transform_indices = @transform_9, window_bounds = array<i64: 1, 256>}, {pipeline_mode = #tpu.pipeline_mode<synchronous>, transform_indices = @transform_10, window_bounds = array<i64: 1, 256>}, {pipeline_mode = #tpu.pipeline_mode<synchronous>, transform_indices = @transform_11, window_bounds = array<i64: 256, 64>}, {pipeline_mode = #tpu.pipeline_mode<synchronous>, transform_indices = @transform_12, window_bounds = array<i64: 1, 64>}, {pipeline_mode = #tpu.pipeline_mode<synchronous>, transform_indices = @transform_13, window_bounds = array<i64: 1, 64>}, {pipeline_mode = #tpu.pipeline_mode<synchronous>, transform_indices = @transform_14, window_bounds = array<i64: 1, 1>}, {transform_indices = @transform_15, window_bounds = array<i64: 1, 2>}]} {
    %c0 = arith.constant 0 : index
    %c0_0 = arith.constant 0 : index
    %0 = vector.load %arg2[%c0, %c0_0] : memref<2x32xf32, #tpu.memory_space<vmem>>, vector<2x32xf32>
    %c0_1 = arith.constant 0 : index
    %c0_2 = arith.constant 0 : index
    %1 = vector.load %arg7[%c0_1, %c0_2] : memref<32x256xf32, #tpu.memory_space<vmem>>, vector<32x256xf32>
    %cst = arith.constant dense<0.000000e+00> : vector<2x256xf32>
    %2 = tpu.matmul %0, %1, %cst {dimension_numbers = #tpu.dot_dimension_numbers<[1], [0], [0], [1], [0, 0, 1, 1], [], []>} : vector<2x32xf32>, vector<32x256xf32>, vector<2x256xf32> -> vector<2x256xf32>
    %c0_3 = arith.constant 0 : index
    %c0_4 = arith.constant 0 : index
    %3 = vector.load %arg3[%c0_3, %c0_4] : memref<2x32xf32, #tpu.memory_space<vmem>>, vector<2x32xf32>
    %c0_5 = arith.constant 0 : index
    %c0_6 = arith.constant 0 : index
    %4 = vector.load %arg8[%c0_5, %c0_6] : memref<32x256xf32, #tpu.memory_space<vmem>>, vector<32x256xf32>
    %cst_7 = arith.constant dense<0.000000e+00> : vector<2x256xf32>
    %5 = tpu.matmul %3, %4, %cst_7 {dimension_numbers = #tpu.dot_dimension_numbers<[1], [0], [0], [1], [0, 0, 1, 1], [], []>} : vector<2x32xf32>, vector<32x256xf32>, vector<2x256xf32> -> vector<2x256xf32>
    %6 = arith.addf %2, %5 : vector<2x256xf32>
    %c0_8 = arith.constant 0 : index
    %c0_9 = arith.constant 0 : index
    %7 = vector.load %arg4[%c0_8, %c0_9] : memref<2x32xf32, #tpu.memory_space<vmem>>, vector<2x32xf32>
    %c0_10 = arith.constant 0 : index
    %c0_11 = arith.constant 0 : index
    %8 = vector.load %arg9[%c0_10, %c0_11] : memref<32x256xf32, #tpu.memory_space<vmem>>, vector<32x256xf32>
    %cst_12 = arith.constant dense<0.000000e+00> : vector<2x256xf32>
    %9 = tpu.matmul %7, %8, %cst_12 {dimension_numbers = #tpu.dot_dimension_numbers<[1], [0], [0], [1], [0, 0, 1, 1], [], []>} : vector<2x32xf32>, vector<32x256xf32>, vector<2x256xf32> -> vector<2x256xf32>
    %10 = arith.addf %6, %9 : vector<2x256xf32>
    %c0_13 = arith.constant 0 : index
    %c0_14 = arith.constant 0 : index
    %11 = vector.load %arg1[%c0_13, %c0_14] : memref<2x1xf32, #tpu.memory_space<vmem>>, vector<2x1xf32>
    %c0_15 = arith.constant 0 : index
    %c0_16 = arith.constant 0 : index
    %12 = vector.load %arg6[%c0_15, %c0_16] : memref<1x256xf32, #tpu.memory_space<vmem>>, vector<1x256xf32>
    %13 = vector.broadcast %11 : vector<2x1xf32> to vector<2x256xf32>
    %14 = vector.broadcast %12 : vector<1x256xf32> to vector<2x256xf32>
    %15 = arith.mulf %13, %14 : vector<2x256xf32>
    %16 = arith.addf %10, %15 : vector<2x256xf32>
    %c0_17 = arith.constant 0 : index
    %c0_18 = arith.constant 0 : index
    %17 = vector.load %arg5[%c0_17, %c0_18] : memref<2x1xf32, #tpu.memory_space<vmem>>, vector<2x1xf32>
    %c0_19 = arith.constant 0 : index
    %c0_20 = arith.constant 0 : index
    %18 = vector.load %arg10[%c0_19, %c0_20] : memref<1x256xf32, #tpu.memory_space<vmem>>, vector<1x256xf32>
    %19 = vector.broadcast %17 : vector<2x1xf32> to vector<2x256xf32>
    %20 = vector.broadcast %18 : vector<1x256xf32> to vector<2x256xf32>
    %21 = arith.mulf %19, %20 : vector<2x256xf32>
    %22 = arith.addf %16, %21 : vector<2x256xf32>
    %c0_21 = arith.constant 0 : index
    %c0_22 = arith.constant 0 : index
    %23 = vector.load %arg11[%c0_21, %c0_22] : memref<1x256xf32, #tpu.memory_space<vmem>>, vector<1x256xf32>
    %24 = vector.broadcast %23 : vector<1x256xf32> to vector<2x256xf32>
    %25 = arith.addf %22, %24 : vector<2x256xf32>
    %cst_23 = arith.constant 5.000000e-01 : f32
    %26 = vector.broadcast %cst_23 : f32 to vector<2x256xf32>
    %27 = arith.mulf %26, %25 : vector<2x256xf32>
    %28 = math.tanh %27 : vector<2x256xf32>
    %cst_24 = arith.constant 1.000000e+00 : f32
    %29 = vector.broadcast %cst_24 : f32 to vector<2x256xf32>
    %30 = arith.addf %28, %29 : vector<2x256xf32>
    %cst_25 = arith.constant 5.000000e-01 : f32
    %31 = vector.broadcast %cst_25 : f32 to vector<2x256xf32>
    %32 = arith.mulf %31, %30 : vector<2x256xf32>
    %c0_26 = arith.constant 0 : index
    %c0_27 = arith.constant 0 : index
    %33 = vector.load %arg12[%c0_26, %c0_27] : memref<256x64xf32, #tpu.memory_space<vmem>>, vector<256x64xf32>
    %cst_28 = arith.constant dense<0.000000e+00> : vector<2x64xf32>
    %34 = tpu.matmul %32, %33, %cst_28 {dimension_numbers = #tpu.dot_dimension_numbers<[1], [0], [0], [1], [0, 0, 1, 1], [], []>} : vector<2x256xf32>, vector<256x64xf32>, vector<2x64xf32> -> vector<2x64xf32>
    %c0_29 = arith.constant 0 : index
    %c0_30 = arith.constant 0 : index
    %35 = vector.load %arg13[%c0_29, %c0_30] : memref<1x64xf32, #tpu.memory_space<vmem>>, vector<1x64xf32>
    %36 = vector.broadcast %35 : vector<1x64xf32> to vector<2x64xf32>
    %37 = arith.addf %34, %36 : vector<2x64xf32>
    %cst_31 = arith.constant 0.000000e+00 : f32
    %38 = vector.broadcast %cst_31 : f32 to vector<2x64xf32>
    %39 = arith.maximumf %37, %38 : vector<2x64xf32>
    %c0_32 = arith.constant 0 : index
    %c0_33 = arith.constant 0 : index
    %40 = vector.load %arg14[%c0_32, %c0_33] : memref<1x64xf32, #tpu.memory_space<vmem>>, vector<1x64xf32>
    %41 = vector.broadcast %40 : vector<1x64xf32> to vector<2x64xf32>
    %42 = arith.mulf %39, %41 : vector<2x64xf32>
    %cst_34 = arith.constant dense<0.000000e+00> : vector<2xf32>
    %43 = vector.multi_reduction <add>, %42, %cst_34 [1] : vector<2x64xf32> to vector<2xf32>
    %44 = vector.shape_cast %43 : vector<2xf32> to vector<1x2xf32>
    %c0_35 = arith.constant 0 : index
    %c0_36 = arith.constant 0 : index
    %45 = vector.load %arg15[%c0_35, %c0_36] : memref<1x1xf32, #tpu.memory_space<vmem>>, vector<1x1xf32>
    %46 = vector.broadcast %45 : vector<1x1xf32> to vector<1x2xf32>
    %47 = arith.addf %44, %46 : vector<1x2xf32>
    %c0_37 = arith.constant 0 : index
    %c0_38 = arith.constant 0 : index
    %48 = vector.load %arg16[%c0_37, %c0_38] : memref<1x2xf32, #tpu.memory_space<vmem>>, vector<1x2xf32>
    tpu.vector_store %arg16[%c0_37, %c0_38], %47 {strides = array<i32>} : memref<1x2xf32, #tpu.memory_space<vmem>>, vector<1x2xf32>,
    return
  }
  func.func @transform_0(%arg0: i32) -> (i32, i32) {
    %c0_i32 = arith.constant 0 : i32
    %c0_i32_0 = arith.constant 0 : i32
    return %arg0, %c0_i32 : i32, i32
  }
  func.func @transform_1(%arg0: i32) -> (i32, i32) {
    %c0_i32 = arith.constant 0 : i32
    %c0_i32_0 = arith.constant 0 : i32
    return %arg0, %c0_i32 : i32, i32
  }
  func.func @transform_2(%arg0: i32) -> (i32, i32) {
    %c0_i32 = arith.constant 0 : i32
    %c0_i32_0 = arith.constant 0 : i32
    return %arg0, %c0_i32 : i32, i32
  }
  func.func @transform_3(%arg0: i32) -> (i32, i32) {
    %c0_i32 = arith.constant 0 : i32
    %c0_i32_0 = arith.constant 0 : i32
    return %arg0, %c0_i32 : i32, i32
  }
  func.func @transform_4(%arg0: i32) -> (i32, i32) {
    %c0_i32 = arith.constant 0 : i32
    %c0_i32_0 = arith.constant 0 : i32
    return %arg0, %c0_i32 : i32, i32
  }
  func.func @transform_5(%arg0: i32) -> (i32, i32) {
    %c0_i32 = arith.constant 0 : i32
    %c0_i32_0 = arith.constant 0 : i32
    %c0_i32_1 = arith.constant 0 : i32
    return %c0_i32, %c0_i32_0 : i32, i32
  }
  func.func @transform_6(%arg0: i32) -> (i32, i32) {
    %c0_i32 = arith.constant 0 : i32
    %c0_i32_0 = arith.constant 0 : i32
    %c0_i32_1 = arith.constant 0 : i32
    return %c0_i32, %c0_i32_0 : i32, i32
  }
  func.func @transform_7(%arg0: i32) -> (i32, i32) {
    %c0_i32 = arith.constant 0 : i32
    %c0_i32_0 = arith.constant 0 : i32
    %c0_i32_1 = arith.constant 0 : i32
    return %c0_i32, %c0_i32_0 : i32, i32
  }
  func.func @transform_8(%arg0: i32) -> (i32, i32) {
    %c0_i32 = arith.constant 0 : i32
    %c0_i32_0 = arith.constant 0 : i32
    %c0_i32_1 = arith.constant 0 : i32
    return %c0_i32, %c0_i32_0 : i32, i32
  }
  func.func @transform_9(%arg0: i32) -> (i32, i32) {
    %c0_i32 = arith.constant 0 : i32
    %c0_i32_0 = arith.constant 0 : i32
    %c0_i32_1 = arith.constant 0 : i32
    return %c0_i32, %c0_i32_0 : i32, i32
  }
  func.func @transform_10(%arg0: i32) -> (i32, i32) {
    %c0_i32 = arith.constant 0 : i32
    %c0_i32_0 = arith.constant 0 : i32
    %c0_i32_1 = arith.constant 0 : i32
    return %c0_i32, %c0_i32_0 : i32, i32
  }
  func.func @transform_11(%arg0: i32) -> (i32, i32) {
    %c0_i32 = arith.constant 0 : i32
    %c0_i32_0 = arith.constant 0 : i32
    %c0_i32_1 = arith.constant 0 : i32
    return %c0_i32, %c0_i32_0 : i32, i32
  }
  func.func @transform_12(%arg0: i32) -> (i32, i32) {
    %c0_i32 = arith.constant 0 : i32
    %c0_i32_0 = arith.constant 0 : i32
    %c0_i32_1 = arith.constant 0 : i32
    return %c0_i32, %c0_i32_0 : i32, i32
  }
  func.func @transform_13(%arg0: i32) -> (i32, i32) {
    %c0_i32 = arith.constant 0 : i32
    %c0_i32_0 = arith.constant 0 : i32
    %c0_i32_1 = arith.constant 0 : i32
    return %c0_i32, %c0_i32_0 : i32, i32
  }
  func.func @transform_14(%arg0: i32) -> (i32, i32) {
    %c0_i32 = arith.constant 0 : i32
    %c0_i32_0 = arith.constant 0 : i32
    %c0_i32_1 = arith.constant 0 : i32
    return %c0_i32, %c0_i32_0 : i32, i32
  }
  func.func @transform_15(%arg0: i32) -> (i32, i32) {
    %c0_i32 = arith.constant 0 : i32
    %c0_i32_0 = arith.constant 0 : i32
    return %c0_i32, %arg0 : i32, i32
  }
}

</mosaic_0001>

<bundles_post_ra>
// kernel: deviation_monitor.1
= control target key start
LH: loop header
LB: loop body
LE: loop exit
PB: predicated region body
PF: predicated region fallthrough
CT: control target
= control target key end

     0   :  { %s963_s0 = inlined_call_operand.vmem [shape: f32[2,1], index: 0, kind: input, shape index: {}]   ;;  %s964_s1 = inlined_call_operand.vmem [shape: f32[2,32], index: 1, kind: input, shape index: {}]   ;;  %s965_s2 = inlined_call_operand.vmem [shape: f32[2,32], index: 2, kind: input, shape index: {}]   ;;  %s966_s3 = inlined_call_operand.vmem [shape: f32[2,32], index: 3, kind: input, shape index: {}]   ;;  %s967_s4 = inlined_call_operand.vmem [shape: f32[2,1], index: 4, kind: input, shape index: {}]   ;;  %s968_s5 = inlined_call_operand.vmem [shape: f32[1,256], index: 5, kind: input, shape index: {}]   ;;  %s969_s6 = inlined_call_operand.vmem [shape: f32[32,256], index: 6, kind: input, shape index: {}]   ;;  %s970_s7 = inlined_call_operand.vmem [shape: f32[32,256], index: 7, kind: input, shape index: {}]   ;;  %s971_s8 = inlined_call_operand.vmem [shape: f32[32,256], index: 8, kind: input, shape index: {}]   ;;  %s972_s9 = inlined_call_operand.vmem [shape: f32[1,256], index: 9, kind: input, shape index: {}]   ;;  %s973_s10 = inlined_call_operand.vmem [shape: f32[1,256], index: 10, kind: input, shape index: {}]   ;;  %s974_s11 = inlined_call_operand.vmem [shape: f32[256,64], index: 11, kind: input, shape index: {}]   ;;  %s975_s12 = inlined_call_operand.vmem [shape: f32[1,64], index: 12, kind: input, shape index: {}]   ;;  %s976_s13 = inlined_call_operand.vmem [shape: f32[1,64], index: 13, kind: input, shape index: {}]   ;;  %s977_s14 = inlined_call_operand.<no memory space> [shape: f32[1,1], index: 14, kind: input, shape index: {}]   ;;  %s978_s15 = inlined_call_operand.hbm [shape: f32[1,2], index: 15, kind: output, shape index: {}]  }
   0x1   :  { %v20_v0 = vstv %s977_s14 }
   0x2   :  { %21 = vst [vmem:[#allocation2] sm:$0x1] %v20_v0 }
   0x3   :  { %v64_v1 = vld [vmem:[%s970_s7 + $0x8] sm:$0xff]  ;;  %v66_v2 = vld [vmem:[%s970_s7 + $0x18] sm:$0xff]  ;;  %v63_v3 = vld [vmem:[%s970_s7] sm:$0xff]  ;;  %v661_v8 = vmov 0.0   ;;  %v662_v9 = vmov 0   ;;  %vm71_vm0 = vcmask 261120  }
   0x4   :  { %v568_v4 = vpack.c.bf16 %v66_v2, %v64_v1  ;;  %v65_v5 = vld [vmem:[%s970_s7 + $0x10] sm:$0xff]  ;;  %v68_v6 = vld [vmem:[%s970_s7 + $0x28] sm:$0xff]  ;;  %v70_v7 = vld [vmem:[%s970_s7 + $0x38] sm:$0xff]  ;;  %139 = vmatprep.mubr.f32.mxu0 %v661_v8  ;;  %631 = vset.pattern.permute.xlu0 %v662_v9 }
   0x5   :  { %v570_v10 = vpack.c.bf16 %v65_v5, %v63_v3  ;;  %v572_v11 = vpack.c.bf16 %v70_v7, %v68_v6  ;;  %v67_v12 = vld [vmem:[%s970_s7 + $0x20] sm:$0xff]  ;;  %v69_v13 = vld [vmem:[%s970_s7 + $0x30] sm:$0xff]  ;;  %632 = vset.pattern.permute.xlu1 %v662_v9  ;;  %v55_v14 = vld [vmem:[%s969_s6 + $0x8] sm:$0xff] }
   0x6   :  { %569 = vmatprep.subr.bf16.mxu0 %v568_v4  ;;  %v57_v15 = vld [vmem:[%s969_s6 + $0x18] sm:$0xff]  ;;  %v574_v16 = vpack.c.bf16 %v69_v13, %v67_v12  ;;  %v54_v18 = vld [vmem:[%s969_s6] sm:$0xff]  ;;  %v56_v19 = vld [vmem:[%s969_s6 + $0x10] sm:$0xff] }
   0x7   :  { %571 = vmatpush1.bf16.msra.mxu0 %v570_v10  ;;  %v576_v17 = vpack.c.bf16 %v57_v15, %v55_v14  ;;  %v59_v20 = vld [vmem:[%s969_s6 + $0x28] sm:$0xff]  ;;  %v61_v21 = vld [vmem:[%s969_s6 + $0x38] sm:$0xff]  ;;  %v62_v22 = vld [vmem:[%s965_s2] sm:$0x3]  ;;  %v578_v23 = vpack.c.bf16 %v56_v19, %v54_v18 }
   0x8   :  { %573 = vmatprep.subr.bf16.mxu0 %v572_v11  ;;  %v58_v24 = vld [vmem:[%s969_s6 + $0x20] sm:$0xff]  ;;  %v60_v25 = vld [vmem:[%s969_s6 + $0x30] sm:$0xff]  ;;  %v222_v26 = vld [vmem:[%s971_s8 + $0x8] sm:$0xff]  ;;  %v580_v27 = vpack.c.bf16 %v61_v21, %v59_v20 }
   0x9   :  { %v224_v28 = vld [vmem:[%s971_s8 + $0x18] sm:$0xff]  ;;  %v305_v29 = vld [vmem:[%s963_s0] sm:$0x3]  ;;  %v388_v32 = vld [vmem:[%s974_s11 + $0x88] sm:$0xff]  ;;  %v582_v38 = vpack.c.bf16 %v60_v25, %v58_v24 }
   0xa   :  { %v387_v30 = vld [vmem:[%s974_s11 + $0x80] sm:$0xff]  ;;  %309 = vperm.xlu0 %631, %v305_v29   ;;  %v372_v35 = vld [vmem:[%s974_s11 + $0x8] sm:$0xff]  ;;  %v389_v36 = vld [vmem:[%s974_s11 + $0x90] sm:$0xff] }
   0xb   :  { %575 = vmatpush1.bf16.msra.mxu0 %v574_v16  ;;  %v327_v31 = vld [vmem:[%s967_s4] sm:$0x3]  ;;  %v592_v34 = vpack.c.bf16 %v388_v32, %v387_v30  ;;  %v390_v37 = vld [vmem:[%s974_s11 + $0x98] sm:$0xff] }
   0xc   :  { %577 = vmatprep.subr.bf16.mxu0 %v576_v17  ;;  %v371_v33 = vld [vmem:[%s974_s11] sm:$0xff]  ;;  %v596_v40 = vpack.c.bf16 %v390_v37, %v389_v36 }
   0xd   :  { %v594_v39 = vpack.c.bf16 %v372_v35, %v371_v33 }
   0xe   :  { %528 = vmatmul.mubr.msk.f32.vlgmr.msra.gmra.mrb[0].mxu0 %vm71_vm0, %v62_v22 }
   0xf   :  { %579 = vmatpush1.bf16.msra.mxu0 %v578_v23  ;;  %213 = vmatprep.mubr.f32.mxu0 %v661_v8 }
  0x10   :  { %22 = vsyncpa [#allocation4], 0  ;;  %581 = vmatprep.subr.bf16.mxu0 %v580_v27  ;;  %v584_v41 = vpack.c.bf16 %v224_v28, %v222_v26  ;;  %v221_v42 = vld [vmem:[%s971_s8] sm:$0xff]  ;;  %v223_v43 = vld [vmem:[%s971_s8 + $0x10] sm:$0xff]  ;;  %593 = vmatprep.subr.bf16.mxu1 %v592_v34  ;;  %v313_v28 = vlaneseq  ;;  %vm489_vm1 = vcmask 517120   ;;  %vm512_vm2 = vcmask 8192  }
  0x11   :  { %v226_v44 = vld [vmem:[%s971_s8 + $0x28] sm:$0xff]  ;;  %v228_v45 = vld [vmem:[%s971_s8 + $0x38] sm:$0xff]  ;;  %331 = vperm.xlu0 %631, %v327_v31   ;;  %595 = vmatpush3.bf16.msra.mxu1 %v594_v39  ;;  %v373_v46 = vld [vmem:[%s974_s11 + $0x10] sm:$0xff]  ;;  %v586_v50 = vpack.c.bf16 %v223_v43, %v221_v42 }
  0x12   :  { %v374_v47 = vld [vmem:[%s974_s11 + $0x18] sm:$0xff]  ;;  %597 = vmatprep.subr.bf16.mxu1 %v596_v40  ;;  %v53_v49 = vld [vmem:[%s964_s1] sm:$0x3]  ;;  %v588_v51 = vpack.c.bf16 %v228_v45, %v226_v44  ;;  %v227_v53 = vld [vmem:[%s971_s8 + $0x30] sm:$0xff]  ;;  %v314_v29 = vshrl.u32 %v313_v28, 7 }
  0x13   :  { %v598_v48 = vpack.c.bf16 %v374_v47, %v373_v46  ;;  %583 = vmatpush1.bf16.msra.mxu0 %v582_v38  ;;  %v225_v52 = vld [vmem:[%s971_s8 + $0x20] sm:$0xff]  ;;  %v392_v57 = vld [vmem:[%s974_s11 + $0xa8] sm:$0xff]  ;;  %v393_v62 = vld [vmem:[%s974_s11 + $0xb0] sm:$0xff] }
  0x14   :  { %585 = vmatprep.subr.bf16.mxu0 %v584_v41  ;;  %v590_v54 = vpack.c.bf16 %v227_v53, %v225_v52  ;;  %v220_v55 = vld [vmem:[%s966_s3] sm:$0x3]  ;;  %v376_v60 = vld [vmem:[%s974_s11 + $0x28] sm:$0xff]  ;;  %v394_v63 = vld [vmem:[%s974_s11 + $0xb8] sm:$0xff]  ;;  %v315_v30 = vsub.s32 0, %v314_v29  ;;  %v319_v32 = vsub.s32 1, %v314_v29 }
  0x15   :  { %599 = vmatpush3.bf16.msra.mxu1 %v598_v48  ;;  %v391_v56 = vld [vmem:[%s974_s11 + $0xa0] sm:$0xff]  ;;  %v604_v0 = vpack.c.bf16 %v394_v63, %v393_v62  ;;  %v377_v1 = vld [vmem:[%s974_s11 + $0x30] sm:$0xff]  ;;  %v378_v2 = vld [vmem:[%s974_s11 + $0x38] sm:$0xff] }
  0x16   :  { %529 = vmatmul.mubr.msk.f32.vlgmr.msra.gmra.mrb[0].mxu0 %vm71_vm0, %v53_v49  ;;  %v600_v58 = vpack.c.bf16 %v392_v57, %v391_v56  ;;  %v375_v59 = vld [vmem:[%s974_s11 + $0x20] sm:$0xff]  ;;  %v606_v3 = vpack.c.bf16 %v378_v2, %v377_v1  ;;  %v396_v5 = vld [vmem:[%s974_s11 + $0xc8] sm:$0xff]  ;;  %v397_v10 = vld [vmem:[%s974_s11 + $0xd0] sm:$0xff] }
  0x17   :  { %587 = vmatpush1.bf16.msra.mxu0 %v586_v50  ;;  %296 = vmatprep.mubr.f32.mxu0 %v661_v8  ;;  %v602_v61 = vpack.c.bf16 %v376_v60, %v375_v59  ;;  %v395_v4 = vld [vmem:[%s974_s11 + $0xc0] sm:$0xff]  ;;  %v380_v8 = vld [vmem:[%s974_s11 + $0x48] sm:$0xff]  ;;  %v398_v11 = vld [vmem:[%s974_s11 + $0xd8] sm:$0xff] }
  0x18   :  { %589 = vmatprep.subr.bf16.mxu0 %v588_v51  ;;  %601 = vmatprep.subr.bf16.mxu1 %v600_v58  ;;  %v608_v6 = vpack.c.bf16 %v396_v5, %v395_v4  ;;  %v379_v7 = vld [vmem:[%s974_s11 + $0x40] sm:$0xff]  ;;  %v381_v12 = vld [vmem:[%s974_s11 + $0x50] sm:$0xff]  ;;  %v612_v13 = vpack.c.bf16 %v398_v11, %v397_v10  ;;  %v382_v14 = vld [vmem:[%s974_s11 + $0x58] sm:$0xff]  ;;  %v506_v10 = vand.u32 127, %v313_v28 }
  0x19   :  { %603 = vmatpush3.bf16.msra.mxu1 %v602_v61  ;;  %v610_v9 = vpack.c.bf16 %v380_v8, %v379_v7  ;;  %v399_v15 = vld [vmem:[%s974_s11 + $0xe0] sm:$0xff]  ;;  %v400_v16 = vld [vmem:[%s974_s11 + $0xe8] sm:$0xff]  ;;  %v614_v17 = vpack.c.bf16 %v382_v14, %v381_v12  ;;  %v401_v21 = vld [vmem:[%s974_s11 + $0xf0] sm:$0xff] }
  0x1a   :  { %605 = vmatprep.subr.bf16.mxu1 %v604_v0  ;;  %v616_v18 = vpack.c.bf16 %v400_v16, %v399_v15  ;;  %v383_v19 = vld [vmem:[%s974_s11 + $0x60] sm:$0xff]  ;;  %v384_v20 = vld [vmem:[%s974_s11 + $0x68] sm:$0xff]  ;;  %v402_v22 = vld [vmem:[%s974_s11 + $0xf8] sm:$0xff] }
  0x1b   :  { %591 = vmatpush1.bf16.msra.mxu0 %v590_v54  ;;  %v618_v23 = vpack.c.bf16 %v384_v20, %v383_v19  ;;  %v620_v24 = vpack.c.bf16 %v402_v22, %v401_v21  ;;  %v385_v25 = vld [vmem:[%s974_s11 + $0x70] sm:$0xff]  ;;  %v386_v26 = vld [vmem:[%s974_s11 + $0x78] sm:$0xff]  ;;  %v306_v31 = vld [vmem:[%s968_s5] sm:$0x3] }
  0x1c   :  { %v622_v27 = vpack.c.bf16 %v386_v26, %v385_v25  ;;  %v316_v34 = vrot.slane %v306_v31, %v315_v30  ;;  %v328_v35 = vld [vmem:[%s972_s9] sm:$0x3]  ;;  %v320_v36 = vrot.slane %v306_v31, %v319_v32 }
  0x1d   :  { %607 = vmatpush3.bf16.msra.mxu1 %v606_v3  ;;  %v338_v38 = vrot.slane %v328_v35, %v315_v30  ;;  %v342_v39 = vrot.slane %v328_v35, %v319_v32  ;;  %v349_v41 = vld [vmem:[%s973_s10] sm:$0x3] }
  0x1e   :  { %530 = vmatmul.mubr.msk.f32.vlgmr.msra.gmra.mrb[0].mxu0 %vm71_vm0, %v220_v55  ;;  %609 = vmatprep.subr.bf16.mxu1 %v608_v6  ;;  %v354_v46 = vrot.slane %v349_v41, %v315_v30  ;;  %v358_v50 = vrot.slane %v349_v41, %v319_v32  ;;  %v531_v0 = vld [vmem:[%s975_s12] ss:$0 sm:$0xff]  ;;  %s663_s12 = smov [#allocation3]  }
  0x1f   :  { %v532_v4 = vld [vmem:[%s976_s13] ss:$0 sm:$0xff]  ;;  %s520_s23 = sshll.u32 %s663_s12, 4  ;;  %s521_s23 = int_to_ptr.vmem [resolvable:$true] %s520_s23 }
  0x20   :  { %v493_v8 = vld [vmem:[#allocation2] sm:$0x1]  ;;  %s637_s13 = scalar_lea.vmem %s521_s23, 16  ;;  %s641_s24 = scalar_lea.vmem %s521_s23, 32 }
  0x21   :  { %611 = vmatpush3.bf16.msra.mxu1 %v610_v9  ;;  %p638_p0 = scmp.ne.s32.totalorder %s521_s23, %s637_s13  ;;  %p642_p1 = scmp.lt.s32.totalorder %s521_s23, %s521_s23 }
  0x22   :  { %613 = vmatprep.subr.bf16.mxu1 %v612_v13  ;;  %v509_v13 = vsub.s32 %v506_v10, %v314_v29  ;;  %p643_p2 = scmp.lt.s32.totalorder %s641_s24, %s637_s13 }
  0x24   :  { %p644_p3 = por %p643_p2, %p642_p1 }
  0x25   :  { %615 = vmatpush3.bf16.msra.mxu1 %v614_v17 }
  0x26   :  { %617 = vmatprep.subr.bf16.mxu1 %v616_v18  ;;  %p645_p4 = pnand %p644_p3, %p638_p0 }
  0x29   :  { %619 = vmatpush3.bf16.msra.mxu1 %v618_v23 }
  0x2a   :  { %621 = vmatprep.subr.bf16.mxu1 %v620_v24 }
  0x2d   :  { %623 = vmatpush3.bf16.msra.mxu1 %v622_v27 }
  0x89   :  { %v310_v33 = vpop.permute.xlu0 %309 }
  0x8a   :  { %v323_v37 = vmul.f32 %v316_v34, %v310_v33  ;;  %v324_v42 = vmul.f32 %v320_v36, %v310_v33 }
  0x90   :  { %v332_v40 = vpop.permute.xlu0 %331 }
  0x91   :  { %v345_v44 = vmul.f32 %v338_v38, %v332_v40  ;;  %v346_v48 = vmul.f32 %v342_v39, %v332_v40 }
  0xf1   :  { %v298_v43 = vpop.f32.mrb[0].mxu0 }
  0xf2   :  { %v325_v45 = vadd.f32 %v323_v37, %v298_v43  ;;  %v300_v47 = vpop.f32.mrb[1].mxu0 }
  0xf3   :  { %v326_v49 = vadd.f32 %v324_v42, %v300_v47 }
  0xf4   :  { %v347_v51 = vadd.f32 %v345_v44, %v325_v45 }
  0xf5   :  { %v348_v52 = vadd.f32 %v346_v48, %v326_v49 }
  0xf6   :  { %v361_v53 = vadd.f32 %v354_v46, %v347_v51 }
  0xf7   :  { %v362_v54 = vadd.f32 %v358_v50, %v348_v52 }
  0xf8   :  { %v363_v55 = vmul.f32 0.5, %v361_v53 }
  0xf9   :  { %v364_v56 = vmul.f32 0.5, %v362_v54 }
  0xfa   :  { %633 = vtanh.f32 %v363_v55 }
  0xfb   :  { %635 = vtanh.f32 %v364_v56 }
 0x104   :  { %v634_v57 = vpop.eup %633 }
 0x105   :  { %v636_v58 = vpop.eup %635  ;;  %v367_v59 = vadd.f32 1.0, %v634_v57 }
 0x106   :  { %v368_v60 = vadd.f32 1.0, %v636_v58 }
 0x107   :  { %v369_v62 = vmul.f32 0.5, %v367_v59 }
 0x108   :  { %v370_v61 = vmul.f32 0.5, %v368_v60 }
 0x10a   :  { %474 = vmatprep.mubr.f32.mxu1 %v370_v61 }
 0x10b   :  { %475 = vmatmul.mubr.f32.vlgmr.msra.gmra.mrb[0].mxu1 %v369_v62 }
 0x1de   :  { %v565_v63 = vpop.f32.mrb[0].mxu1 }
 0x1df   :  { %v566_v1 = vpop.f32.mrb[1].mxu1 }
 0x1e0   :  { %v567_v2 = vadd.f32 %v566_v1, %v565_v63 }
 0x1e2   :  { %v477_v3 = vadd.f32 %v567_v2, %v531_v0 }
 0x1e4   :  { %v480_v5 = vmax.f32 %v477_v3, 0.0 }
 0x1e6   :  { %v488_v6 = vmul.f32 %v532_v4, %v480_v5 }
 0x1e8   :  { %v490_v7 = vsel %vm489_vm1, %v488_v6, 0.0 }
 0x1e9   :  { %491 = vadd.xlane.f32.xlu1 %v490_v7 }
 0x1fa   :  { %496 = vperm.xlu1 %632, %v493_v8  }
 0x276   :  { %v492_v9 = vpop.xlane.xlu1 %491 }
 0x27a   :  { %v497_v11 = vpop.permute.xlu1 %496 }
 0x27b   :  { %v502_v12 = vrot.slane %v497_v11, %v315_v30 }
 0x27d   :  { %v503_v14 = vadd.f32 %v502_v12, %v492_v9 }
 0x27f   :  { %v510_v15 = vrot.slane %v503_v14, %v509_v13 }
 0x281   :  { %513 = vst.msk [vmem:[#allocation3] sm:$0x1] %vm512_vm2, %v510_v15 }
 0x282   :  { %648 = shalt.err (!%p645_p4)
}
 0x283   :  { %s649_s25 = scalar_lea.hbm %s978_s15, 16 }
 0x284   :  { %p650_p5 = scmp.ne.s32.totalorder %s978_s15, %s649_s25  ;;  %p653_p6 = scmp.lt.u32.totalorder %s649_s25, %s978_s15 }
 0x286   :  { %p655_p7 = pnand %p653_p6, %p650_p5 }
 0x288   :  { %658 = shalt.err (!%p655_p7)
}
 0x289   :  { %523 = dma.vmem_to_hbm [thread:$0]  %s521_s23, 16, %s978_s15, [#allocation4]  }
 0x28a   :  { %659 = dma.done.wait [#allocation4], 16  }
 0x28b   :  { %660 = vsyncadd [#allocation4], 4294967280 }
 0x28c   :  { %527 = vsyncpa [#allocation4], 1 }

</bundles_post_ra>
